<compile_context>
chip_gen: v7x
topology: tpu7x:2x2x1
jax: 0.10.0
libtpu: 0.0.40
codegen_flags: <defaults>
</compile_context>

<pallas_src>
import math

import jax
import jax.numpy as jnp
from jax.experimental import pallas as pl
from jax.experimental.pallas import tpu as pltpu


# ----------------------------------------------------------------------------
# Buffer init (mirrors the PyTorch __init__; runs once, outside the kernel).
# ----------------------------------------------------------------------------
def make_positional_encoding(d_model: int, max_len: int = 30) -> jnp.ndarray:
    position = jnp.arange(0, max_len, dtype=jnp.float32)[:, None]             # (max_len, 1)
    div_term = jnp.exp(
        jnp.arange(0, d_model, 2, dtype=jnp.float32) * (-math.log(10000.0) / d_model)
    )                                                                          # (ceil(d/2),)
    angles = position * div_term                                               # (max_len, ceil(d/2))
    pe = jnp.zeros((max_len, d_model), dtype=jnp.float32)
    pe = pe.at[:, 0::2].set(jnp.sin(angles))
    # Odd d_model: PyTorch's __init__ would error; we truncate cos columns instead.
    pe = pe.at[:, 1::2].set(jnp.cos(angles)[:, : d_model // 2])
    return pe


# ----------------------------------------------------------------------------
# Kernel: elementwise add of a (block_rows, 128) pe tile onto x, f32 accumulate.
# ----------------------------------------------------------------------------
def _pe_add_kernel(x_ref, pe_ref, o_ref):
    o_ref[...] = (x_ref[...].astype(jnp.float32) + pe_ref[...]).astype(o_ref.dtype)


# Max rows per block: 8192 * 128 * 4B = 4 MiB per f32 buffer.
# 3 streams (x, pe, out) * 2 double-buffers * 4 MiB = 24 MiB peak VMEM.
_MAX_BLOCK_ROWS = 8192
_VMEM_LIMIT_BYTES = 48 * 1024 * 1024   # > 24 MiB need; < v7x's 64 MiB physical.


def _choose_block_rows(rows: int) -> int:
    """rows >= 8.  Returns a multiple-of-8 block height."""
    if rows <= 256:
        if rows % 8 == 0:
            return rows                      # single tiny block
        return (rows // 8) * 8               # 2 blocks; partial tail masked by Pallas
    # rows > 256: at least 2 blocks so v7x's two TensorCores split the bandwidth,
    # capped so VMEM stays within _VMEM_LIMIT_BYTES.
    half = (rows + 1) // 2
    return min(_MAX_BLOCK_ROWS, ((half + 7) // 8) * 8)


class PositionalEncoding:
    """JAX/Pallas port of the PyTorch module. Call with x of shape (seq_len, d_model)."""

    def __init__(self, d_model: int, max_len: int = 30):
        self.d_model = d_model
        self.max_len = max_len
        self.pe = make_positional_encoding(d_model, max_len)      # (max_len, d_model) f32

        # Precompute ONCE: lane-dense, zero-padded, 8-row-aligned flat pe slab.
        total = max_len * d_model
        pe_rows = max(8, ((pl.cdiv(total, 128) + 7) // 8) * 8)
        flat = jnp.zeros((pe_rows * 128,), jnp.float32).at[:total].set(self.pe.reshape(-1))
        self.pe_flat = flat.reshape(pe_rows, 128)                  # (pe_rows, 128) f32

    def __call__(self, x: jnp.ndarray) -> jnp.ndarray:
        seq_len, d_model = x.shape
        if d_model != self.d_model:
            raise ValueError(f"d_model mismatch: got {d_model}, expected {self.d_model}")
        if seq_len > self.max_len:
            raise ValueError(f"seq_len={seq_len} exceeds max_len={self.max_len}")

        total = seq_len * d_model
        rows = max(8, pl.cdiv(total, 128))          # >= 8 so blocks never exceed the array
        padded_total = rows * 128

        # Lane-dense flat view of x; zero-pad the tail row(s) only when needed.
        if padded_total == total:
            xf = x.reshape(rows, 128)
        else:
            xf = jnp.pad(x.reshape(-1), (0, padded_total - total)).reshape(rows, 128)

        block_rows = _choose_block_rows(rows)
        grid = (pl.cdiv(rows, block_rows),)

        out_flat = pl.pallas_call(
            _pe_add_kernel,
            out_shape=jax.ShapeDtypeStruct((rows, 128), x.dtype),
            grid=grid,
            in_specs=[
                pl.BlockSpec((block_rows, 128), lambda i: (i, 0)),   # x tile
                pl.BlockSpec((block_rows, 128), lambda i: (i, 0)),   # pe tile (same block idx)
            ],
            out_specs=pl.BlockSpec((block_rows, 128), lambda i: (i, 0)),
            input_output_aliases={0: 0},            # output may reuse xf's HBM buffer
            compiler_params=pltpu.CompilerParams(
                dimension_semantics=("parallel",),
                vmem_limit_bytes=_VMEM_LIMIT_BYTES,
            ),
        )(xf, self.pe_flat)

        if padded_total == total:
            return out_flat.reshape(seq_len, d_model)
        return out_flat.reshape(-1)[:total].reshape(seq_len, d_model)


if __name__ == "__main__":
    key = jax.random.PRNGKey(0)

    # Module at its nominal size.
    mod = PositionalEncoding(d_model=32, max_len=30)

    # Case 1: seq_len=8 (total=256 -> padded to one 8x128 slab).
    x1 = jax.random.normal(key, (8, 32), dtype=jnp.float32)
    ref1 = x1 + mod.pe[:8, :]
    out1 = jax.block_until_ready(mod(x1))
    assert out1.shape == (8, 32)
    assert jnp.allclose(out1, ref1, atol=1e-6, rtol=1e-6)

    # Case 2: seq_len=30 (total=960, not 128-divisible -> padded lane-dense path).
    x2 = jax.random.normal(jax.random.PRNGKey(1), (30, 32), dtype=jnp.float32)
    ref2 = x2 + mod.pe[:30, :]
    out2 = jax.block_until_ready(mod(x2))
    assert out2.shape == (30, 32)
    assert jnp.allclose(out2, ref2, atol=1e-6, rtol=1e-6)

    # Case 3: larger module — exercises the exact lane-dense (no-pad) path and
    # the multi-block pipelined grid (rows=2048 -> 2 blocks of 1024 rows).
    mod_big = PositionalEncoding(d_model=128, max_len=4096)
    x3 = jax.random.normal(jax.random.PRNGKey(2), (2048, 128), dtype=jnp.float32)
    ref3 = x3 + mod_big.pe[:2048, :]
    out3 = jax.block_until_ready(mod_big(x3))
    assert out3.shape == (2048, 128)
    assert jnp.allclose(out3, ref3, atol=1e-6, rtol=1e-6)

    print("KERNEL_OK")
</pallas_src>

<mosaic_0001>
module attributes {stable_mosaic.version = 11 : i64} {
  func.func @_pe_add_kernel(%arg0: i32, %arg1: memref<8x128xf32, #tpu.memory_space<vmem>>, %arg2: memref<8x128xf32, #tpu.memory_space<vmem>>, %arg3: memref<8x128xf32, #tpu.memory_space<vmem>>) attributes {dimension_semantics = [#tpu.dimension_semantics<parallel>], iteration_bounds = array<i64: 1>, scalar_prefetch = 0 : i64, scratch_operands = 0 : i64, tpu.core_type = #tpu.core_type<tc>, window_params = [{transform_indices = @transform_0, window_bounds = array<i64: 8, 128>}, {transform_indices = @transform_1, window_bounds = array<i64: 8, 128>}, {transform_indices = @transform_2, window_bounds = array<i64: 8, 128>}]} {
    %c0 = arith.constant 0 : index
    %c0_0 = arith.constant 0 : index
    %0 = vector.load %arg1[%c0, %c0_0] : memref<8x128xf32, #tpu.memory_space<vmem>>, vector<8x128xf32>
    %c0_1 = arith.constant 0 : index
    %c0_2 = arith.constant 0 : index
    %1 = vector.load %arg2[%c0_1, %c0_2] : memref<8x128xf32, #tpu.memory_space<vmem>>, vector<8x128xf32>
    %2 = arith.addf %0, %1 : vector<8x128xf32>
    %c0_3 = arith.constant 0 : index
    %c0_4 = arith.constant 0 : index
    %3 = vector.load %arg3[%c0_3, %c0_4] : memref<8x128xf32, #tpu.memory_space<vmem>>, vector<8x128xf32>
    tpu.vector_store %arg3[%c0_3, %c0_4], %2 {strides = array<i32>} : memref<8x128xf32, #tpu.memory_space<vmem>>, vector<8x128xf32>,
    return
  }
  func.func @transform_0(%arg0: i32) -> (i32, i32) {
    %c0_i32 = arith.constant 0 : i32
    %c0_i32_0 = arith.constant 0 : i32
    return %arg0, %c0_i32 : i32, i32
  }
  func.func @transform_1(%arg0: i32) -> (i32, i32) {
    %c0_i32 = arith.constant 0 : i32
    %c0_i32_0 = arith.constant 0 : i32
    return %arg0, %c0_i32 : i32, i32
  }
  func.func @transform_2(%arg0: i32) -> (i32, i32) {
    %c0_i32 = arith.constant 0 : i32
    %c0_i32_0 = arith.constant 0 : i32
    return %arg0, %c0_i32 : i32, i32
  }
}

</mosaic_0001>

<bundles_post_ra>
// kernel: tpu_custom_call.1
= control target key start
LH: loop header
LB: loop body
LE: loop exit
PB: predicated region body
PF: predicated region fallthrough
CT: control target
= control target key end

     0   :  { %7 = vsyncpa [#allocation3], 0  ;;  %s137_s0 = inlined_call_operand.hbm [shape: f32[8,128], index: 0, kind: input, shape index: {}, may-alias: {0,2}]   ;;  %s138_s1 = inlined_call_operand.vmem [shape: f32[8,128], index: 1, kind: input, shape index: {}]   ;;  %s139_s2 = inlined_call_operand.hbm [shape: f32[8,128], index: 2, kind: output, shape index: {}, may-alias: {0,2}]  }
   0x1   :  { %8 = vsyncpa [#allocation4], 0  ;;  %s93_s9 = smov [#allocation2]   ;;  %s45_s13 = scalar_lea.hbm %s137_s0, 128 }
   0x2   :  { %s15_s10 = sshll.u32 %s93_s9, 4  ;;  %p46_p0 = scmp.ne.s32.totalorder %s137_s0, %s45_s13  ;;  %s16_s10 = int_to_ptr.vmem [resolvable:$true] %s15_s10 }
   0x3   :  { %p49_p1 = scmp.lt.u32.totalorder %s45_s13, %s137_s0 }
   0x5   :  { %p51_p2 = pnand %p49_p1, %p46_p0 }
   0x7   :  { %54 = shalt.err (!%p51_p2)
}
   0x8   :  { %s55_s18 = scalar_lea.vmem %s16_s10, 128  ;;  %p60_p4 = scmp.lt.s32.totalorder %s16_s10, %s16_s10 }
   0x9   :  { %p56_p3 = scmp.ne.s32.totalorder %s16_s10, %s55_s18  ;;  %p61_p5 = scmp.lt.s32.totalorder %s55_s18, %s55_s18 }
   0xb   :  { %p62_p6 = por %p61_p5, %p60_p4 }
   0xd   :  { %p63_p7 = pnand %p62_p6, %p56_p3 }
   0xf   :  { %66 = shalt.err (!%p63_p7)
}
  0x10   :  { %18 = dma.hbm_to_vmem [thread:$0]  %s137_s0, 128, %s16_s10, [#allocation3]  }
  0x11   :  { %89 = dma.done.wait [#allocation3], 128  }
  0x12   :  { %90 = vsyncadd [#allocation3], 4294967168  ;;  %s94_s21 = smov [#allocation5]   ;;  %v24_v0 = vld [vmem:[#allocation2] sm:$0xff] }
  0x13   :  { %s34_s22 = sshll.u32 %s94_s21, 4  ;;  %v25_v1 = vld [vmem:[%s138_s1] sm:$0xff]  ;;  %s35_s22 = int_to_ptr.vmem [resolvable:$true] %s34_s22 }
  0x14   :  { %v26_v2 = vadd.f32 %v25_v1, %v24_v0  ;;  %s67_s25 = scalar_lea.vmem %s35_s22, 128  ;;  %p72_p9 = scmp.lt.s32.totalorder %s35_s22, %s35_s22 }
  0x15   :  { %p68_p8 = scmp.ne.s32.totalorder %s35_s22, %s67_s25  ;;  %p73_p10 = scmp.lt.s32.totalorder %s67_s25, %s67_s25 }
  0x16   :  { %27 = vst [vmem:[#allocation5] sm:$0xff] %v26_v2 }
  0x17   :  { %p74_p11 = por %p73_p10, %p72_p9 }
  0x19   :  { %p75_p12 = pnand %p74_p11, %p68_p8 }
  0x1b   :  { %78 = shalt.err (!%p75_p12)
}
  0x1c   :  { %s79_s27 = scalar_lea.hbm %s139_s2, 128 }
  0x1d   :  { %p80_p13 = scmp.ne.s32.totalorder %s139_s2, %s79_s27  ;;  %p83_p0 = scmp.lt.u32.totalorder %s79_s27, %s139_s2 }
  0x1f   :  { %p85_p1 = pnand %p83_p0, %p80_p13 }
  0x21   :  { %88 = shalt.err (!%p85_p1)
}
  0x22   :  { %37 = dma.vmem_to_hbm [thread:$0]  %s35_s22, 128, %s139_s2, [#allocation4]  }
  0x23   :  { %91 = dma.done.wait [#allocation4], 128  }
  0x24   :  { %92 = vsyncadd [#allocation4], 4294967168 }
  0x25   :  { %41 = vsyncpa [#allocation3], 1 }
  0x26   :  { %42 = vsyncpa [#allocation4], 1 }

</bundles_post_ra>
